<compile_context>
chip_gen: v7x
topology: tpu7x:2x2x1
jax: 0.10.0
libtpu: 0.0.40
codegen_flags: <defaults>
</compile_context>

<pallas_src>
import functools

import jax
import jax.numpy as jnp
from jax import lax
from jax.experimental import pallas as pl
from jax.experimental.pallas import tpu as pltpu

EPS = 1e-12  # matches torch.nn.functional.normalize default eps (clamp_min on the norm)


def contrastive_head_kernel(b_blk, sb_ref, x_ref, w_ref, o_ref):
    # sb_ref: (2,)            SMEM (scalar prefetch)  [exp(logit_scale), bias]
    # x_ref : (b_blk, C, HW)  VMEM  region features; channels on sublanes, pixels on lanes
    # w_ref : (b_blk, K, C)   VMEM  text embeddings
    # o_ref : (b_blk, K, HW)  VMEM  lane-dense output
    scale = sb_ref[0]
    bias = sb_ref[1]

    # Small, fully unrolled loop over the batch elements of this block: one
    # MXU matmul per element.
    for b in range(b_blk):
        x = x_ref[b]                                   # (C, HW), input dtype
        w = w_ref[b]                                   # (K, C),  input dtype

        # Norm math in f32 (v5e has no bf16 VPU/EUP); rsqrt -> EUP slot.
        xf = x.astype(jnp.float32)
        wf = w.astype(jnp.float32)

        # L2-normalize text embeddings along C (lane reduce per row).
        w_sumsq = jnp.sum(wf * wf, axis=-1, keepdims=True)            # (K, 1)
        wn = wf * lax.rsqrt(jnp.maximum(w_sumsq, EPS * EPS))          # (K, C) f32

        # Per-pixel 1/||x||_C (sublane reduce) fused with exp(logit_scale)
        # into a single post-matmul column scale.
        x_sumsq = jnp.sum(xf * xf, axis=0, keepdims=True)             # (1, HW)
        col_scale = scale * lax.rsqrt(jnp.maximum(x_sumsq, EPS * EPS))  # (1, HW)

        # (K, C) @ (C, HW) -> (K, HW); feed the MXU operands in the input
        # dtype (bf16 stays bf16), accumulate in f32.
        sim = jnp.dot(wn.astype(x.dtype), x, preferred_element_type=jnp.float32)

        o_ref[b] = (sim * col_scale + bias).astype(o_ref.dtype)


@jax.jit
def contrastive_head_pallas(x_bchw, w_bkc, logit_scale, bias):
    # x_bchw: (B, C, H, W), w_bkc: (B, K, C) -> (B, K, H, W)
    B, C, H, W = x_bchw.shape
    _, K, Cw = w_bkc.shape
    HW = H * W

    # Free reshape of the contiguous NCHW buffer; keep input dtypes as-is.
    x2 = x_bchw.reshape(B, C, HW)
    w2 = w_bkc
    out_dtype = x_bchw.dtype

    # Scalars loaded once via scalar prefetch (SMEM).
    sb = jnp.stack([jnp.exp(logit_scale).reshape(()),
                    jnp.reshape(bias, ())]).astype(jnp.float32)       # (2,)

    # Batch blocking: at most 2 grid steps (keeps both v7x TCs busy, amortizes
    # the per-step fixed cost on single-TC v5e/v6e).
    if B >= 2 and B % 2 == 0:
        b_blk = B // 2
    else:
        b_blk = 1
    steps = B // b_blk

    flops = 2 * B * K * C * HW
    bytes_accessed = (x2.size * x2.dtype.itemsize
                      + w2.size * w2.dtype.itemsize
                      + B * K * HW * jnp.dtype(out_dtype).itemsize)

    kernel = functools.partial(contrastive_head_kernel, b_blk)

    out = pl.pallas_call(
        kernel,
        out_shape=jax.ShapeDtypeStruct((B, K, HW), out_dtype),
        grid_spec=pltpu.PrefetchScalarGridSpec(
            num_scalar_prefetch=1,
            grid=(steps,),
            in_specs=[
                pl.BlockSpec((b_blk, C, HW), lambda b, sb: (b, 0, 0)),
                pl.BlockSpec((b_blk, K, Cw), lambda b, sb: (b, 0, 0)),
            ],
            out_specs=pl.BlockSpec((b_blk, K, HW), lambda b, sb: (b, 0, 0)),
        ),
        compiler_params=pltpu.CompilerParams(
            dimension_semantics=("parallel",)),
        cost_estimate=pl.CostEstimate(
            flops=flops, transcendentals=0, bytes_accessed=bytes_accessed),
    )(sb, x2, w2)

    return out.reshape(B, K, H, W)   # free reshape back to (B, K, H, W)


def reference_forward(x, w, logit_scale, bias):
    """Pure-JAX reference matching the PyTorch forward."""
    xn = x / jnp.maximum(jnp.sqrt(jnp.sum(x * x, axis=1, keepdims=True)), EPS)
    wn = w / jnp.maximum(jnp.sqrt(jnp.sum(w * w, axis=-1, keepdims=True)), EPS)
    sim = jnp.einsum('bchw,bkc->bkhw', xn, wn,
                     precision=jax.lax.Precision.HIGHEST)
    return sim * jnp.exp(logit_scale) + jnp.reshape(bias, ())


if __name__ == "__main__":
    # Small shapes consistent with the module: B=2 images, C=32 feature
    # channels, K=8 text embeddings, 16x16 spatial.
    B, C, K, H, W = 2, 32, 8, 16, 16

    key = jax.random.PRNGKey(0)
    kx, kw = jax.random.split(key)
    x = jax.random.normal(kx, (B, C, H, W), jnp.float32)
    w = jax.random.normal(kw, (B, K, C), jnp.float32)

    # Module parameters at their PyTorch init values.
    bias = jnp.asarray(-10.0, dtype=jnp.float32)
    logit_scale = jnp.asarray(jnp.log(1.0 / 0.07), dtype=jnp.float32)

    out = jax.block_until_ready(contrastive_head_pallas(x, w, logit_scale, bias))
    ref = reference_forward(x, w, logit_scale, bias)

    assert out.shape == (B, K, H, W), out.shape
    assert jnp.allclose(out, ref, rtol=1e-2, atol=1e-2), \
        float(jnp.max(jnp.abs(out - ref)))
    print("KERNEL_OK")
</pallas_src>

<mosaic_0001>
module attributes {stable_mosaic.version = 11 : i64} {
  func.func @contrastive_head_kernel(%arg0: i32, %arg1: memref<2xf32, #tpu.memory_space<smem>>, %arg2: memref<1x32x256xf32, #tpu.memory_space<vmem>>, %arg3: memref<1x8x32xf32, #tpu.memory_space<vmem>>, %arg4: memref<1x8x256xf32, #tpu.memory_space<vmem>>) attributes {dimension_semantics = [#tpu.dimension_semantics<parallel>], iteration_bounds = array<i64: 2>, scalar_prefetch = 1 : i64, scratch_operands = 0 : i64, tpu.core_type = #tpu.core_type<tc>, window_params = [{transform_indices = @transform_0, window_bounds = array<i64: 1, 32, 256>}, {transform_indices = @transform_1, window_bounds = array<i64: 1, 8, 32>}, {transform_indices = @transform_2, window_bounds = array<i64: 1, 8, 256>}]} {
    %c0 = arith.constant 0 : index
    %0 = memref.load %arg1[%c0] : memref<2xf32, #tpu.memory_space<smem>>
    %c1 = arith.constant 1 : index
    %1 = memref.load %arg1[%c1] : memref<2xf32, #tpu.memory_space<smem>>
    %c0_0 = arith.constant 0 : index
    %c0_1 = arith.constant 0 : index
    %c0_2 = arith.constant 0 : index
    %2 = vector.load %arg2[%c0_0, %c0_1, %c0_2] : memref<1x32x256xf32, #tpu.memory_space<vmem>>, vector<1x32x256xf32>
    %3 = vector.shape_cast %2 : vector<1x32x256xf32> to vector<32x256xf32>
    %c0_3 = arith.constant 0 : index
    %c0_4 = arith.constant 0 : index
    %c0_5 = arith.constant 0 : index
    %4 = vector.load %arg3[%c0_3, %c0_4, %c0_5] : memref<1x8x32xf32, #tpu.memory_space<vmem>>, vector<1x8x32xf32>
    %5 = vector.shape_cast %4 : vector<1x8x32xf32> to vector<8x32xf32>
    %6 = arith.mulf %5, %5 : vector<8x32xf32>
    %cst = arith.constant dense<0.000000e+00> : vector<8xf32>
    %7 = vector.multi_reduction <add>, %6, %cst [1] : vector<8x32xf32> to vector<8xf32>
    %8 = vector.shape_cast %7 : vector<8xf32> to vector<8x1xf32>
    %cst_6 = arith.constant 1.000000e-24 : f32
    %9 = vector.broadcast %cst_6 : f32 to vector<8x1xf32>
    %10 = arith.maximumf %8, %9 : vector<8x1xf32>
    %11 = math.rsqrt %10 : vector<8x1xf32>
    %12 = vector.broadcast %11 : vector<8x1xf32> to vector<8x32xf32>
    %13 = arith.mulf %5, %12 : vector<8x32xf32>
    %14 = arith.mulf %3, %3 : vector<32x256xf32>
    %cst_7 = arith.constant dense<0.000000e+00> : vector<256xf32>
    %15 = vector.multi_reduction <add>, %14, %cst_7 [0] : vector<32x256xf32> to vector<256xf32>
    %16 = vector.shape_cast %15 : vector<256xf32> to vector<1x256xf32>
    %cst_8 = arith.constant 1.000000e-24 : f32
    %17 = vector.broadcast %cst_8 : f32 to vector<1x256xf32>
    %18 = arith.maximumf %16, %17 : vector<1x256xf32>
    %19 = math.rsqrt %18 : vector<1x256xf32>
    %20 = vector.broadcast %0 : f32 to vector<1x256xf32>
    %21 = arith.mulf %20, %19 : vector<1x256xf32>
    %cst_9 = arith.constant dense<0.000000e+00> : vector<8x256xf32>
    %22 = tpu.matmul %13, %3, %cst_9 {dimension_numbers = #tpu.dot_dimension_numbers<[1], [0], [0], [1], [0, 0, 1, 1], [], []>} : vector<8x32xf32>, vector<32x256xf32>, vector<8x256xf32> -> vector<8x256xf32>
    %23 = vector.broadcast %21 : vector<1x256xf32> to vector<8x256xf32>
    %24 = arith.mulf %22, %23 : vector<8x256xf32>
    %25 = vector.broadcast %1 : f32 to vector<8x256xf32>
    %26 = arith.addf %24, %25 : vector<8x256xf32>
    %c0_10 = arith.constant 0 : index
    %c0_11 = arith.constant 0 : index
    %c0_12 = arith.constant 0 : index
    %27 = vector.load %arg4[%c0_10, %c0_11, %c0_12] : memref<1x8x256xf32, #tpu.memory_space<vmem>>, vector<1x8x256xf32>
    %28 = vector.shape_cast %27 : vector<1x8x256xf32> to vector<8x256xf32>
    %29 = vector.shape_cast %26 : vector<8x256xf32> to vector<1x8x256xf32>
    tpu.vector_store %arg4[%c0_10, %c0_11, %c0_12], %29 {strides = array<i32>} : memref<1x8x256xf32, #tpu.memory_space<vmem>>, vector<1x8x256xf32>,
    return
  }
  func.func @transform_0(%arg0: i32, %arg1: memref<2xf32, #tpu.memory_space<smem>>) -> (i32, i32, i32) {
    %c0_i32 = arith.constant 0 : i32
    %c0_i32_0 = arith.constant 0 : i32
    %c0_i32_1 = arith.constant 0 : i32
    return %arg0, %c0_i32, %c0_i32_0 : i32, i32, i32
  }
  func.func @transform_1(%arg0: i32, %arg1: memref<2xf32, #tpu.memory_space<smem>>) -> (i32, i32, i32) {
    %c0_i32 = arith.constant 0 : i32
    %c0_i32_0 = arith.constant 0 : i32
    %c0_i32_1 = arith.constant 0 : i32
    return %arg0, %c0_i32, %c0_i32_0 : i32, i32, i32
  }
  func.func @transform_2(%arg0: i32, %arg1: memref<2xf32, #tpu.memory_space<smem>>) -> (i32, i32, i32) {
    %c0_i32 = arith.constant 0 : i32
    %c0_i32_0 = arith.constant 0 : i32
    %c0_i32_1 = arith.constant 0 : i32
    return %arg0, %c0_i32, %c0_i32_0 : i32, i32, i32
  }
}

</mosaic_0001>

<bundles_post_ra>
// kernel: contrastive_head_pallas.1
= control target key start
LH: loop header
LB: loop body
LE: loop exit
PB: predicated region body
PF: predicated region fallthrough
CT: control target
= control target key end

     0   :  { %s482_s0 = inlined_call_operand.vmem [shape: f32[2], index: 0, kind: input, shape index: {}]   ;;  %s483_s1 = inlined_call_operand.vmem [shape: f32[2,32,256], index: 1, kind: input, shape index: {}]   ;;  %s484_s2 = inlined_call_operand.vmem [shape: f32[2,8,32], index: 2, kind: input, shape index: {}]   ;;  %s485_s3 = inlined_call_operand.vmem [shape: f32[2,8,256], index: 3, kind: output, shape index: {}]  }
   0x1   :  { %s8_s14 = sshll.u32 %s482_s0, 4  ;;  %s9_s14 = int_to_ptr.vmem [resolvable:$true] %s8_s14 }
   0x2   :  { %s408_s15 = scalar_lea.vmem %s9_s14, 16  ;;  %p413_p1 = scmp.lt.s32.totalorder %s9_s14, %s9_s14 }
   0x3   :  { %p409_p0 = scmp.ne.s32.totalorder %s9_s14, %s408_s15  ;;  %p414_p2 = scmp.lt.s32.totalorder %s408_s15, %s408_s15 }
   0x5   :  { %p415_p3 = por %p414_p2, %p413_p1 }
   0x7   :  { %p416_p4 = pnand %p415_p3, %p409_p0 }
   0x9   :  { %419 = shalt.err (!%p416_p4)  }
   0xa   :  { %s430_s16 = smov [#allocation3]  }
   0xb   :  { %11 = dma.vmem_to_smem %s9_s14, 16, %s430_s16, [#allocation2] }
   0xc   :  { %424 = dma.done.wait [#allocation2], 16 }
   0xd   :  { %425 = vsyncadd [#allocation2], 4294967280 }
   0xe   :  { %13 = sfence }
   0xf   :  { %s455_s17 = smov 0  }
  0x10 LB: > { %s368_s0 = sadd.s32 4294967295, %s428_s17   ;;  %p372_p5 = scmp.ge.s32.totalorder %s428_s17, 1  ;;  %s428_s17 = sphi %s455_s17, %s19_s17  }
  0x11   : > { %p128_p6 = scmp.lt.s32.totalorder %s428_s17, 3 }
  0x13   : > { %p129_p7 = pnand %p372_p5, %p128_p6 }
  0x14   : > { %p154_p8 = scmp.lt.s32.totalorder (!%p129_p7), %s368_s0, 1  ;;  %vm180_vm0 = vcmask (!%p129_p7), 261120   ;;  %v431_v13 = vmov (!%p129_p7), 0.0   ;;  %s168_s26 = sld [smem:[#allocation3]] (!%p129_p7) }
  0x15   : > { %132 = sbr.rel (%p129_p7) target bundleno = 410 (0x19a), region = 28  ;;  %287 = vmatprep.mubr.f32.mxu0 (!%p129_p7), %v431_v13  ;;  %s378_s27 = sld [smem:[#allocation3 + $0x1]] (!%p129_p7) }
  0x1a   : > { %v217_v49 = vstv (!%p129_p7), %s168_s26 }
  0x1b   : > { %v296_v54 = vstv (!%p129_p7), %s378_s27 }
  0x1c   : > { %s487_s0 = smov (!%p154_p8, %s368_s0), 1 }
  0x1d   : > { %s375_s18 = sshll.u32 %s487_s0, 3  ;;  %s382_s22 = sshll.u32 %s487_s0, 6 }
  0x1e   : > { %s162_s21 = scalar_lea.vmem %s484_s2, %s375_s18  ;;  %s158_s25 = scalar_lea.vmem %s483_s1, %s382_s22 }
  0x1f   : > { %v178_v0 = vld [vmem:[%s162_s21] sm:$0xff]  ;;  %v171_v3 = vld [vmem:[%s158_s25 + $0x8] sm:$0xff]  ;;  %v173_v4 = vld [vmem:[%s158_s25 + $0x18] sm:$0xff]  ;;  %s383_s28 = sshll.u32 %s487_s0, 4 }
  0x20   : > { %v179_v1 = vmul.f32 %v178_v0, %v178_v0  ;;  %v170_v5 = vld [vmem:[%s158_s25] sm:$0xff]  ;;  %v188_v6 = vmul.f32 %v171_v3, %v171_v3  ;;  %v190_v7 = vmul.f32 %v173_v4, %v173_v4  ;;  %v384_v8 = vpack.c.bf16 %v173_v4, %v171_v3  ;;  %v172_v9 = vld [vmem:[%s158_s25 + $0x10] sm:$0xff]  ;;  %v175_v11 = vld [vmem:[%s158_s25 + $0x28] sm:$0xff]  ;;  %s167_s4 = scalar_lea.vmem %s485_s3, %s383_s28 }
  0x21   : > { %v187_v10 = vmul.f32 %v170_v5, %v170_v5  ;;  %v177_v12 = vld [vmem:[%s158_s25 + $0x38] sm:$0xff]  ;;  %v189_v14 = vmul.f32 %v172_v9, %v172_v9  ;;  %v386_v15 = vpack.c.bf16 %v172_v9, %v170_v5  ;;  %v192_v16 = vmul.f32 %v175_v11, %v175_v11  ;;  %v174_v17 = vld [vmem:[%s158_s25 + $0x20] sm:$0xff]  ;;  %v176_v18 = vld [vmem:[%s158_s25 + $0x30] sm:$0xff] }
  0x22   : > { %v181_v2 = vsel %vm180_vm0, %v179_v1, 0.0  ;;  %v204_v19 = vadd.f32 %v190_v7, %v188_v6  ;;  %385 = vmatprep.subr.bf16.mxu0 %v384_v8  ;;  %v194_v20 = vmul.f32 %v177_v12, %v177_v12  ;;  %v388_v21 = vpack.c.bf16 %v177_v12, %v175_v11 }
  0x23   : > { %182 = vadd.xlane.f32.xlu0 %v181_v2  ;;  %v191_v22 = vmul.f32 %v174_v17, %v174_v17  ;;  %v195_v23 = vadd.f32 %v189_v14, %v187_v10  ;;  %387 = vmatpush1.bf16.msra.mxu0 %v386_v15  ;;  %v193_v24 = vmul.f32 %v176_v18, %v176_v18 }
  0x24   : > { %v390_v25 = vpack.c.bf16 %v176_v18, %v174_v17  ;;  %v205_v26 = vadd.f32 %v204_v19, %v192_v16  ;;  %389 = vmatprep.subr.bf16.mxu0 %v388_v21 }
  0x25   : > { %v196_v27 = vadd.f32 %v195_v23, %v191_v22 }
  0x26   : > { %v206_v28 = vadd.f32 %v205_v26, %v194_v20 }
  0x27   : > { %v197_v29 = vadd.f32 %v196_v27, %v193_v24  ;;  %391 = vmatpush1.bf16.msra.mxu0 %v390_v25 }
  0x28   : > { %v207_v35 = vrot.slane %v206_v28, 4 }
  0x29   : > { %v198_v34 = vrot.slane %v197_v29, 4 }
  0x2a   : > { %v208_v37 = vadd.f32 %v207_v35, %v206_v28 }
  0x2b   : > { %v199_v36 = vadd.f32 %v198_v34, %v197_v29 }
  0x2c   : > { %v209_v39 = vrot.slane %v208_v37, 2 }
  0x2d   : > { %v200_v38 = vrot.slane %v199_v36, 2 }
  0x2e   : > { %v210_v41 = vadd.f32 %v209_v39, %v208_v37 }
  0x2f   : > { %v201_v40 = vadd.f32 %v200_v38, %v199_v36 }
  0x30   : > { %v211_v43 = vrot.slane %v210_v41, 1 }
  0x31   : > { %v202_v42 = vrot.slane %v201_v40, 1 }
  0x32   : > { %v212_v45 = vadd.f32 %v211_v43, %v210_v41 }
  0x33   : > { %v203_v44 = vadd.f32 %v202_v42, %v201_v40 }
  0x34   : > { %v214_v47 = vmax.f32 %v212_v45, 1e-24 }
  0x35   : > { %v213_v46 = vmax.f32 %v203_v44, 1e-24 }
  0xb0   : > { %v183_v30 = vpop.xlane.xlu0 %182 }
  0xb1   : > { %v184_v31 = vmax.f32 %v183_v30, 1e-24 }
  0xb3   : > { %402 = vrsqrt.f32 %v184_v31 }
  0xb4   : > { %404 = vrsqrt.f32 %v213_v46 }
  0xb5   : > { %406 = vrsqrt.f32 %v214_v47 }
  0xbd   : > { %v403_v32 = vpop.eup %402 }
  0xbe   : > { %v186_v33 = vmul.f32 %v403_v32, %v178_v0  ;;  %v405_v48 = vpop.eup %404 }
  0xbf   : > { %v407_v50 = vpop.eup %406  ;;  %v218_v51 = vmul.f32 %v405_v48, %v217_v49 }
  0xc0   : > { %379 = vmatmul.mubr.msk.f32.vlgmr.msra.gmra.mrb[0].mxu0 %vm180_vm0, %v186_v33  ;;  %v219_v52 = vmul.f32 %v407_v50, %v217_v49 }
 0x193   : > { %v289_v53 = vpop.f32.mrb[0].mxu0 }
 0x194   : > { %v294_v55 = vmul.f32 %v289_v53, %v218_v51  ;;  %v291_v56 = vpop.f32.mrb[1].mxu0 }
 0x195   : > { %v295_v57 = vmul.f32 %v291_v56, %v219_v52 }
 0x196   : > { %v297_v58 = vadd.f32 %v296_v54, %v294_v55 }
 0x197   : > { %v298_v59 = vadd.f32 %v296_v54, %v295_v57 }
 0x198   : > { %299 = vst [vmem:[%s167_s4] sm:$0xff] %v297_v58 }
 0x199   : > { %300 = vst [vmem:[%s167_s4 + $0x8] sm:$0xff] %v298_v59 }
 0x19a PF: > { %s19_s17 = sadd.s32 1, %s428_s17  }
 0x19b   : > { %p16_p9 = scmp.ge.s32.totalorder %s19_s17, 4  }
 0x19d   :  { %18 = sbr.rel (!%p16_p9) target bundleno = 16 (0x10), region = 61 }

</bundles_post_ra>
